<compile_context>
chip_gen: v7x
topology: tpu7x:2x2x1
jax: 0.10.0
libtpu: 0.0.40
codegen_flags: <defaults>
</compile_context>

<pallas_src>
import math

import numpy as np
import jax
import jax.numpy as jnp
from jax.experimental import pallas as pl
from jax.experimental.pallas import tpu as pltpu

# ---------------- model config (small, consistent with the module) ----------
FIELD_DIMS = (4, 6, 8, 10)                       # 4 fields
NUM_FIELDS = len(FIELD_DIMS)
TOTAL_FEATS = sum(FIELD_DIMS)                    # 28 vocab rows
EMBED_DIM = 8
CN_LAYERS = 3
EMBED_OUTPUT_DIM = NUM_FIELDS * EMBED_DIM        # D = 32
BATCH = 128
TILE_B = 128                                     # batch tile = lane width.
# NOTE(v7x): with very large batches pick TILE_B = B // (2*k) so the "parallel"
# grid axis has >= 2 steps and both TensorCores get work.


# ---------------- Pallas kernel --------------------------------------------
def cn_kernel(g_ref, tw_ref, consts_ref, out_ref):
    # g_ref      : (F, TILE_B)        int32  global (offset-applied) vocab ids,
    #                                        batch on the lane axis
    # tw_ref     : (TOTAL, L+1)       f32    projected table
    #                                        TW[v, j] = table[v] . W_block(field(v))[:, j]
    # consts_ref : (L+1,)             f32    SMEM: [c_0 .. c_{L-1}, d]
    # out_ref    : (1, TILE_B)        f32    lane-dense prediction row
    g = g_ref[...]                                            # (F, TILE_B)
    tw = tw_ref[...]                                          # (TOTAL, L+1)

    # Multi-hot selection mask over the global vocab.  Per-field offset ranges
    # are disjoint, so summing the F one-hot masks is an exact gather encoding.
    vocab = jax.lax.broadcasted_iota(jnp.int32, (TOTAL_FEATS, TILE_B), 0)
    mh = (vocab == g[0:1, :]).astype(jnp.float32)             # (TOTAL, TILE_B)
    for f in range(1, NUM_FIELDS):                            # static unroll
        mh = mh + (vocab == g[f:f + 1, :]).astype(jnp.float32)

    # P^T rows: pt[j][0, b] = x0[b, :] . W[:, j]   (exact f32 sublane reduce)
    pt = [jnp.sum(mh * tw[:, j:j + 1], axis=0, keepdims=True)   # (1, TILE_B)
          for j in range(CN_LAYERS + 1)]

    # Cross-network recurrence on the per-row scalar alpha:
    #   alpha_0 = 1 ; alpha_{i+1} = alpha_i * (x0.w_i + 1) + beta_i.w_i
    #   pred    = alpha_L * (x0.fc_w) + beta_L.fc_w + fc_b
    alpha = jnp.ones((1, TILE_B), jnp.float32)
    for i in range(CN_LAYERS):                                # static unroll
        alpha = alpha * (pt[i] + 1.0) + consts_ref[i]
    out_ref[...] = alpha * pt[CN_LAYERS] + consts_ref[CN_LAYERS]


def cn_pallas_call(g_t, tw, consts, batch):
    num_tiles = batch // TILE_B
    return pl.pallas_call(
        cn_kernel,
        out_shape=jax.ShapeDtypeStruct((1, batch), jnp.float32),
        grid_spec=pltpu.PrefetchScalarGridSpec(
            num_scalar_prefetch=0,
            grid=(num_tiles,),
            in_specs=[
                # indices: batch tiled along lanes
                pl.BlockSpec((NUM_FIELDS, TILE_B), lambda i: (0, i)),
                # projected table: tiny, resident, same block every step
                pl.BlockSpec((TOTAL_FEATS, CN_LAYERS + 1), lambda i: (0, 0)),
                # loop-invariant scalars live in SMEM (no padded VMEM tile)
                pl.BlockSpec(memory_space=pltpu.MemorySpace.SMEM),
            ],
            out_specs=pl.BlockSpec((1, TILE_B), lambda i: (0, i)),
        ),
        compiler_params=pltpu.CompilerParams(
            dimension_semantics=("parallel",)),
    )(g_t, tw, consts)


# ---------------- parameter init (deterministic, mirrors nn defaults) -------
def init_params(key):
    k_emb, k_wcn, k_fcw, k_fcb = jax.random.split(key, 4)

    emb_table = jax.random.normal(k_emb, (TOTAL_FEATS, EMBED_DIM),
                                  dtype=jnp.float32)

    bound = 1.0 / math.sqrt(EMBED_OUTPUT_DIM)
    w_cn = jax.random.uniform(k_wcn, (CN_LAYERS, EMBED_OUTPUT_DIM),
                              minval=-bound, maxval=bound, dtype=jnp.float32)
    b_cn = jnp.zeros((CN_LAYERS, EMBED_OUTPUT_DIM), dtype=jnp.float32)

    fc_w = jax.random.uniform(k_fcw, (EMBED_OUTPUT_DIM, 1),
                              minval=-bound, maxval=bound, dtype=jnp.float32)
    fc_b = jax.random.uniform(k_fcb, (1, 1),
                              minval=-bound, maxval=bound, dtype=jnp.float32)

    offsets = jnp.asarray(
        np.concatenate([[0], np.cumsum(FIELD_DIMS)[:-1]]), dtype=jnp.int32)
    return emb_table, offsets, w_cn, b_cn, fc_w, fc_b


# ---------------- full CN forward (tiny param precompute + kernel) ----------
def cn_forward(x_idx, params):
    emb_table, offsets, w_cn, b_cn, fc_w, fc_b = params
    B = x_idx.shape[0]
    assert B % TILE_B == 0
    L = CN_LAYERS

    # --- parameter-only precompute (O(vocab*D) floats; batch independent,
    #     could be hoisted out and done once per parameter update) ---
    # W = [w_0 .. w_{L-1}, fc_w] : (D, L+1)
    W = jnp.concatenate([w_cn.T, fc_w], axis=1)
    # Projected per-vocab table TW[v, j] = table[v] . W[field(v)*E:(field(v)+1)*E, j]
    field_ids = np.repeat(np.arange(NUM_FIELDS), FIELD_DIMS)          # (TOTAL,)
    W_blocks = W.reshape(NUM_FIELDS, EMBED_DIM, L + 1)                # (F, E, L+1)
    tw = jnp.sum(emb_table[:, :, None] * W_blocks[field_ids], axis=1)  # (TOTAL, L+1)
    # beta_i = sum_{j<i} b_j ; c_i = beta_i . w_i ; d = beta_L . fc_w + fc_b
    beta = jnp.concatenate(
        [jnp.zeros((1, EMBED_OUTPUT_DIM), jnp.float32),
         jnp.cumsum(b_cn, axis=0)], axis=0)                           # (L+1, D)
    c = jnp.sum(beta[:L] * w_cn, axis=1)                              # (L,)
    d = jnp.sum(beta[L] * fc_w[:, 0]) + fc_b[0, 0]
    consts = jnp.concatenate([c, d[None]]).astype(jnp.float32)        # (L+1,)

    # --- per-example glue: per-field offsets; put batch on the lane axis ---
    g_t = jnp.transpose((x_idx + offsets[None, :]).astype(jnp.int32))  # (F, B)

    out = cn_pallas_call(g_t, tw, consts, B)                          # (1, B)
    return out.reshape(B, 1)


# ---------------- pure-JAX reference (exact f32, element-wise reductions) ----
def cn_reference(x_idx, params):
    emb_table, offsets, w_cn, b_cn, fc_w, fc_b = params
    idx = x_idx + offsets[None, :]
    x0 = jnp.take(emb_table, idx, axis=0).reshape(x_idx.shape[0],
                                                  EMBED_OUTPUT_DIM)
    x = x0
    for i in range(CN_LAYERS):
        xw = jnp.sum(x * w_cn[i][None, :], axis=1, keepdims=True)     # (B, 1)
        x = x0 * xw + b_cn[i][None, :] + x
    return jnp.sum(x * fc_w[:, 0][None, :], axis=1, keepdims=True) + fc_b[0, 0]


if __name__ == "__main__":
    key = jax.random.PRNGKey(0)
    k_params, k_input = jax.random.split(key)
    params = init_params(k_params)

    # Integer categorical features: one index per field, in-range per field.
    maxvals = jnp.asarray(FIELD_DIMS, dtype=jnp.int32)
    u = jax.random.uniform(k_input, (BATCH, NUM_FIELDS))
    x_idx = (u * maxvals[None, :]).astype(jnp.int32)

    out = cn_forward(x_idx, params)
    out = jax.block_until_ready(out)

    ref = cn_reference(x_idx, params)
    assert out.shape == (BATCH, 1)
    assert jnp.allclose(out, ref, atol=1e-4, rtol=1e-4), (
        float(jnp.max(jnp.abs(out - ref))))

    print("KERNEL_OK")
</pallas_src>

<mosaic_0001>
module attributes {stable_mosaic.version = 11 : i64} {
  func.func @cn_kernel(%arg0: i32, %arg1: memref<4x128xi32, #tpu.memory_space<vmem>>, %arg2: memref<28x4xf32, #tpu.memory_space<vmem>>, %arg3: memref<4xf32, #tpu.memory_space<smem>>, %arg4: memref<1x128xf32, #tpu.memory_space<vmem>>) attributes {dimension_semantics = [#tpu.dimension_semantics<parallel>], iteration_bounds = array<i64: 1>, scalar_prefetch = 0 : i64, scratch_operands = 0 : i64, tpu.core_type = #tpu.core_type<tc>, window_params = [{transform_indices = @transform_0, window_bounds = array<i64: 4, 128>}, {pipeline_mode = #tpu.pipeline_mode<synchronous>, transform_indices = @transform_1, window_bounds = array<i64: 28, 4>}, {transform_indices = @transform_2, window_bounds = array<i64: 4>}, {transform_indices = @transform_3, window_bounds = array<i64: 1, 128>}]} {
    %c0 = arith.constant 0 : index
    %c0_0 = arith.constant 0 : index
    %0 = vector.load %arg1[%c0, %c0_0] : memref<4x128xi32, #tpu.memory_space<vmem>>, vector<4x128xi32>
    %c0_1 = arith.constant 0 : index
    %c0_2 = arith.constant 0 : index
    %1 = vector.load %arg2[%c0_1, %c0_2] : memref<28x4xf32, #tpu.memory_space<vmem>>, vector<28x4xf32>
    %2 = tpu.iota {dimensions = array<i32: 0>} : vector<28x128xi32>
    %3 = vector.extract_strided_slice %0 {offsets = [0, 0], sizes = [1, 128], strides = [1, 1]} : vector<4x128xi32> to vector<1x128xi32>
    %4 = vector.broadcast %3 : vector<1x128xi32> to vector<28x128xi32>
    %5 = arith.cmpi eq, %2, %4 : vector<28x128xi32>
    %6 = arith.extui %5 : vector<28x128xi1> to vector<28x128xi32>
    %7 = arith.sitofp %6 : vector<28x128xi32> to vector<28x128xf32>
    %8 = vector.extract_strided_slice %0 {offsets = [1, 0], sizes = [1, 128], strides = [1, 1]} : vector<4x128xi32> to vector<1x128xi32>
    %9 = vector.broadcast %8 : vector<1x128xi32> to vector<28x128xi32>
    %10 = arith.cmpi eq, %2, %9 : vector<28x128xi32>
    %11 = arith.extui %10 : vector<28x128xi1> to vector<28x128xi32>
    %12 = arith.sitofp %11 : vector<28x128xi32> to vector<28x128xf32>
    %13 = arith.addf %7, %12 : vector<28x128xf32>
    %14 = vector.extract_strided_slice %0 {offsets = [2, 0], sizes = [1, 128], strides = [1, 1]} : vector<4x128xi32> to vector<1x128xi32>
    %15 = vector.broadcast %14 : vector<1x128xi32> to vector<28x128xi32>
    %16 = arith.cmpi eq, %2, %15 : vector<28x128xi32>
    %17 = arith.extui %16 : vector<28x128xi1> to vector<28x128xi32>
    %18 = arith.sitofp %17 : vector<28x128xi32> to vector<28x128xf32>
    %19 = arith.addf %13, %18 : vector<28x128xf32>
    %20 = vector.extract_strided_slice %0 {offsets = [3, 0], sizes = [1, 128], strides = [1, 1]} : vector<4x128xi32> to vector<1x128xi32>
    %21 = vector.broadcast %20 : vector<1x128xi32> to vector<28x128xi32>
    %22 = arith.cmpi eq, %2, %21 : vector<28x128xi32>
    %23 = arith.extui %22 : vector<28x128xi1> to vector<28x128xi32>
    %24 = arith.sitofp %23 : vector<28x128xi32> to vector<28x128xf32>
    %25 = arith.addf %19, %24 : vector<28x128xf32>
    %26 = vector.extract_strided_slice %1 {offsets = [0, 0], sizes = [28, 1], strides = [1, 1]} : vector<28x4xf32> to vector<28x1xf32>
    %27 = vector.broadcast %26 : vector<28x1xf32> to vector<28x128xf32>
    %28 = arith.mulf %25, %27 : vector<28x128xf32>
    %cst = arith.constant dense<0.000000e+00> : vector<128xf32>
    %29 = vector.multi_reduction <add>, %28, %cst [0] : vector<28x128xf32> to vector<128xf32>
    %30 = vector.shape_cast %29 : vector<128xf32> to vector<1x128xf32>
    %31 = vector.extract_strided_slice %1 {offsets = [0, 1], sizes = [28, 1], strides = [1, 1]} : vector<28x4xf32> to vector<28x1xf32>
    %32 = vector.broadcast %31 : vector<28x1xf32> to vector<28x128xf32>
    %33 = arith.mulf %25, %32 : vector<28x128xf32>
    %cst_3 = arith.constant dense<0.000000e+00> : vector<128xf32>
    %34 = vector.multi_reduction <add>, %33, %cst_3 [0] : vector<28x128xf32> to vector<128xf32>
    %35 = vector.shape_cast %34 : vector<128xf32> to vector<1x128xf32>
    %36 = vector.extract_strided_slice %1 {offsets = [0, 2], sizes = [28, 1], strides = [1, 1]} : vector<28x4xf32> to vector<28x1xf32>
    %37 = vector.broadcast %36 : vector<28x1xf32> to vector<28x128xf32>
    %38 = arith.mulf %25, %37 : vector<28x128xf32>
    %cst_4 = arith.constant dense<0.000000e+00> : vector<128xf32>
    %39 = vector.multi_reduction <add>, %38, %cst_4 [0] : vector<28x128xf32> to vector<128xf32>
    %40 = vector.shape_cast %39 : vector<128xf32> to vector<1x128xf32>
    %41 = vector.extract_strided_slice %1 {offsets = [0, 3], sizes = [28, 1], strides = [1, 1]} : vector<28x4xf32> to vector<28x1xf32>
    %42 = vector.broadcast %41 : vector<28x1xf32> to vector<28x128xf32>
    %43 = arith.mulf %25, %42 : vector<28x128xf32>
    %cst_5 = arith.constant dense<0.000000e+00> : vector<128xf32>
    %44 = vector.multi_reduction <add>, %43, %cst_5 [0] : vector<28x128xf32> to vector<128xf32>
    %45 = vector.shape_cast %44 : vector<128xf32> to vector<1x128xf32>
    %cst_6 = arith.constant 1.000000e+00 : f32
    %46 = vector.broadcast %cst_6 : f32 to vector<1x128xf32>
    %cst_7 = arith.constant 1.000000e+00 : f32
    %47 = vector.broadcast %cst_7 : f32 to vector<1x128xf32>
    %48 = arith.addf %30, %47 : vector<1x128xf32>
    %49 = arith.mulf %46, %48 : vector<1x128xf32>
    %c0_8 = arith.constant 0 : index
    %50 = memref.load %arg3[%c0_8] : memref<4xf32, #tpu.memory_space<smem>>
    %51 = vector.broadcast %50 : f32 to vector<1x128xf32>
    %52 = arith.addf %49, %51 : vector<1x128xf32>
    %cst_9 = arith.constant 1.000000e+00 : f32
    %53 = vector.broadcast %cst_9 : f32 to vector<1x128xf32>
    %54 = arith.addf %35, %53 : vector<1x128xf32>
    %55 = arith.mulf %52, %54 : vector<1x128xf32>
    %c1 = arith.constant 1 : index
    %56 = memref.load %arg3[%c1] : memref<4xf32, #tpu.memory_space<smem>>
    %57 = vector.broadcast %56 : f32 to vector<1x128xf32>
    %58 = arith.addf %55, %57 : vector<1x128xf32>
    %cst_10 = arith.constant 1.000000e+00 : f32
    %59 = vector.broadcast %cst_10 : f32 to vector<1x128xf32>
    %60 = arith.addf %40, %59 : vector<1x128xf32>
    %61 = arith.mulf %58, %60 : vector<1x128xf32>
    %c2 = arith.constant 2 : index
    %62 = memref.load %arg3[%c2] : memref<4xf32, #tpu.memory_space<smem>>
    %63 = vector.broadcast %62 : f32 to vector<1x128xf32>
    %64 = arith.addf %61, %63 : vector<1x128xf32>
    %65 = arith.mulf %64, %45 : vector<1x128xf32>
    %c3 = arith.constant 3 : index
    %66 = memref.load %arg3[%c3] : memref<4xf32, #tpu.memory_space<smem>>
    %67 = vector.broadcast %66 : f32 to vector<1x128xf32>
    %68 = arith.addf %65, %67 : vector<1x128xf32>
    %c0_11 = arith.constant 0 : index
    %c0_12 = arith.constant 0 : index
    %69 = vector.load %arg4[%c0_11, %c0_12] : memref<1x128xf32, #tpu.memory_space<vmem>>, vector<1x128xf32>
    tpu.vector_store %arg4[%c0_11, %c0_12], %68 {strides = array<i32>} : memref<1x128xf32, #tpu.memory_space<vmem>>, vector<1x128xf32>,
    return
  }
  func.func @transform_0(%arg0: i32) -> (i32, i32) {
    %c0_i32 = arith.constant 0 : i32
    %c0_i32_0 = arith.constant 0 : i32
    return %c0_i32, %arg0 : i32, i32
  }
  func.func @transform_1(%arg0: i32) -> (i32, i32) {
    %c0_i32 = arith.constant 0 : i32
    %c0_i32_0 = arith.constant 0 : i32
    %c0_i32_1 = arith.constant 0 : i32
    return %c0_i32, %c0_i32_0 : i32, i32
  }
  func.func @transform_2(%arg0: i32) -> i32 {
    %c0_i32 = arith.constant 0 : i32
    %c0_i32_0 = arith.constant 0 : i32
    return %c0_i32 : i32
  }
  func.func @transform_3(%arg0: i32) -> (i32, i32) {
    %c0_i32 = arith.constant 0 : i32
    %c0_i32_0 = arith.constant 0 : i32
    return %c0_i32, %arg0 : i32, i32
  }
}

</mosaic_0001>

<bundles_post_ra>
// kernel: tpu_custom_call.1
= control target key start
LH: loop header
LB: loop body
LE: loop exit
PB: predicated region body
PF: predicated region fallthrough
CT: control target
= control target key end

     0   :  { %8 = vsyncpa [#allocation4], 0  ;;  %s408_s0 = inlined_call_operand.vmem [shape: s32[4,128], index: 0, kind: input, shape index: {}]   ;;  %s409_s1 = inlined_call_operand.vmem [shape: f32[28,4], index: 1, kind: input, shape index: {}]   ;;  %s410_s2 = inlined_call_operand.vmem [shape: f32[4], index: 2, kind: input, shape index: {}]   ;;  %s411_s3 = inlined_call_operand.hbm [shape: f32[1,128], index: 3, kind: output, shape index: {}]  }
   0x1   :  { %9 = vsyncpa [#allocation3], 0  ;;  %s20_s14 = sshll.u32 %s410_s2, 4  ;;  %s21_s14 = int_to_ptr.vmem [resolvable:$true] %s20_s14 }
   0x2   :  { %s309_s15 = scalar_lea.vmem %s21_s14, 16  ;;  %p314_p1 = scmp.lt.s32.totalorder %s21_s14, %s21_s14 }
   0x3   :  { %p310_p0 = scmp.ne.s32.totalorder %s21_s14, %s309_s15  ;;  %p315_p2 = scmp.lt.s32.totalorder %s309_s15, %s309_s15 }
   0x5   :  { %p316_p3 = por %p315_p2, %p314_p1 }
   0x7   :  { %p317_p4 = pnand %p316_p3, %p310_p0 }
   0x9   :  { %320 = shalt.err (!%p317_p4)
}
   0xa   :  { %s347_s16 = smov [#allocation2]  }
   0xb   :  { %23 = dma.vmem_to_smem %s21_s14, 16, %s347_s16, [#allocation4]  }
   0xc   :  { %343 = dma.done.wait [#allocation4], 16  }
   0xd   :  { %344 = vsyncadd [#allocation4], 4294967280 }
   0xe   :  { %27 = sfence }
   0xf   :  { %v31_v0 = vld [vmem:[%s409_s1 + $0x10] sm:$0xff]  ;;  %v29_v1 = vld [vmem:[%s409_s1] sm:$0xff]  ;;  %v348_v2 = vmov 0   ;;  %v30_v3 = vld [vmem:[%s409_s1 + $0x8] sm:$0xff]  ;;  %v349_v4 = vmov 1   ;;  %v350_v6 = vmov 2   ;;  %v33_v8 = vlaneseq }
  0x10   :  { %300 = vset.pattern.permute.xlu1 %v348_v2  ;;  %299 = vset.pattern.permute.xlu0 %v348_v2  ;;  %v32_v5 = vld [vmem:[%s409_s1 + $0x18] sm:$0xf]  ;;  %v351_v7 = vmov 3   ;;  %v28_v12 = vld [vmem:[%s408_s0] sm:$0xf]  ;;  %v352_v20 = vmov 0.0  }
  0x11   :  { %126 = vperm.xlu1 %300, %v31_v0   ;;  %116 = vperm.xlu0 %299, %v29_v1   ;;  %v34_v9 = vshrl.u32 %v33_v8, 7  ;;  %s240_s0 = sld [smem:[#allocation2]]  ;;  %s289_s25 = sld [smem:[#allocation2 + $0x1]] }
  0x12   :  { %s290_s26 = sld [smem:[#allocation2 + $0x2]]  ;;  %s291_s27 = sld [smem:[#allocation2 + $0x3]] }
  0x13   :  { %v40_v10 = vsub.s32 0, %v34_v9  ;;  %v56_v11 = vsub.s32 1, %v34_v9  ;;  %v35_v13 = vadd.s32 8, %v34_v9  ;;  %v76_v14 = vsub.s32 2, %v34_v9  ;;  %s353_s28 = smov [#allocation5]  }
  0x14   :  { %v36_v17 = vadd.s32 16, %v34_v9  ;;  %v96_v18 = vsub.s32 3, %v34_v9  ;;  %v37_v23 = vadd.s32 24, %v34_v9  ;;  %s264_s29 = sshll.u32 %s353_s28, 4  ;;  %s265_s29 = int_to_ptr.vmem [resolvable:$true] %s264_s29 }
  0x15   :  { %301 = vset.pattern.permute.xlu1 %v349_v4  ;;  %121 = vperm.xlu0 %299, %v30_v3   ;;  %v41_v15 = vrot.slane %v28_v12, %v40_v10  ;;  %v57_v16 = vrot.slane %v28_v12, %v56_v11  ;;  %v77_v19 = vrot.slane %v28_v12, %v76_v14  ;;  %s321_s30 = scalar_lea.vmem %s265_s29, 16  ;;  %s325_s4 = scalar_lea.vmem %s265_s29, 32 }
  0x16   :  { %150 = vperm.xlu1 %301, %v29_v1   ;;  %v97_v26 = vrot.slane %v28_v12, %v96_v18  ;;  %p322_p5 = scmp.ne.s32.totalorder %s265_s29, %s321_s30  ;;  %p326_p6 = scmp.lt.s32.totalorder %s265_s29, %s265_s29 }
  0x17   :  { %vm42_vm0 = vcmp.eq.s32.totalorder %v34_v9, %v41_v15  ;;  %vm58_vm1 = vcmp.eq.s32.totalorder %v34_v9, %v57_v16  ;;  %vm43_vm2 = vcmp.eq.s32.totalorder %v35_v13, %v41_v15  ;;  %vm59_vm3 = vcmp.eq.s32.totalorder %v35_v13, %v57_v16  ;;  %p327_p7 = scmp.lt.s32.totalorder %s325_s4, %s321_s30 }
  0x18   :  { %v273_v21 = vsel %vm42_vm0, 1.0, %v352_v20  ;;  %v277_v22 = vsel %vm58_vm1, 1.0, %v352_v20  ;;  %vm78_vm4 = vcmp.eq.s32.totalorder %v34_v9, %v77_v19  ;;  %v274_v24 = vsel %vm43_vm2, 1.0, %v352_v20 }
  0x19   :  { %302 = vset.pattern.permute.xlu0 %v349_v4  ;;  %v278_v25 = vsel %vm59_vm3, 1.0, %v352_v20  ;;  %vm79_vm5 = vcmp.eq.s32.totalorder %v35_v13, %v77_v19  ;;  %vm44_vm6 = vcmp.eq.s32.totalorder %v36_v17, %v41_v15  ;;  %vm60_vm7 = vcmp.eq.s32.totalorder %v36_v17, %v57_v16  ;;  %p328_p8 = por %p327_p7, %p326_p6 }
  0x1a   :  { %303 = vset.pattern.permute.xlu1 %v348_v2  ;;  %154 = vperm.xlu0 %302, %v30_v3   ;;  %v70_v27 = vadd.f32 %v277_v22, %v273_v21  ;;  %v281_v28 = vsel %vm78_vm4, 1.0, %v352_v20  ;;  %v71_v29 = vadd.f32 %v278_v25, %v274_v24  ;;  %vm45_vm8 = vcmp.eq.s32.totalorder %v37_v23, %v41_v15 }
  0x1b   :  { %131 = vperm.xlu1 %303, %v32_v5   ;;  %vm61_vm9 = vcmp.eq.s32.totalorder %v37_v23, %v57_v16  ;;  %vm98_vm10 = vcmp.eq.s32.totalorder %v34_v9, %v97_v26  ;;  %v282_v30 = vsel %vm79_vm5, 1.0, %v352_v20  ;;  %v275_v31 = vsel %vm44_vm6, 1.0, %v352_v20  ;;  %p329_p9 = pnand %p328_p8, %p322_p5 }
  0x1c   :  { %v279_v32 = vsel %vm60_vm7, 1.0, %v352_v20  ;;  %vm99_vm11 = vcmp.eq.s32.totalorder %v35_v13, %v97_v26  ;;  %vm80_vm12 = vcmp.eq.s32.totalorder %v36_v17, %v77_v19  ;;  %v90_v33 = vadd.f32 %v281_v28, %v70_v27 }
  0x1d   :  { %v276_v34 = vsel %vm45_vm8, 1.0, %v352_v20  ;;  %v280_v35 = vsel %vm61_vm9, 1.0, %v352_v20  ;;  %v285_v36 = vsel %vm98_vm10, 1.0, %v352_v20  ;;  %v91_v37 = vadd.f32 %v282_v30, %v71_v29 }
  0x1e   :  { %162 = vperm.xlu0 %302, %v32_v5   ;;  %vm81_vm13 = vcmp.eq.s32.totalorder %v37_v23, %v77_v19  ;;  %v72_v38 = vadd.f32 %v279_v32, %v275_v31  ;;  %v286_v39 = vsel %vm99_vm11, 1.0, %v352_v20  ;;  %v283_v40 = vsel %vm80_vm12, 1.0, %v352_v20 }
  0x1f   :  { %304 = vset.pattern.permute.xlu1 %v349_v4  ;;  %v73_v41 = vadd.f32 %v280_v35, %v276_v34  ;;  %vm100_vm14 = vcmp.eq.s32.totalorder %v36_v17, %v97_v26  ;;  %v110_v44 = vadd.f32 %v285_v36, %v90_v33  ;;  %v284_v45 = vsel %vm81_vm13, 1.0, %v352_v20 }
  0x20   :  { %158 = vperm.xlu1 %304, %v31_v0   ;;  %v111_v46 = vadd.f32 %v286_v39, %v91_v37  ;;  %vm101_vm15 = vcmp.eq.s32.totalorder %v37_v23, %v97_v26  ;;  %v92_v47 = vadd.f32 %v283_v40, %v72_v38  ;;  %v287_v48 = vsel %vm100_vm14, 1.0, %v352_v20 }
  0x21   :  { %v93_v49 = vadd.f32 %v284_v45, %v73_v41  ;;  %v288_v52 = vsel %vm101_vm15, 1.0, %v352_v20  ;;  %vm140_vm0 = vcmask 1043456  }
  0x22   :  { %306 = vset.pattern.permute.xlu0 %v350_v6  ;;  %v112_v55 = vadd.f32 %v287_v48, %v92_v47 }
  0x23   :  { %184 = vperm.xlu0 %306, %v30_v3   ;;  %v113_v56 = vadd.f32 %v288_v52, %v93_v49 }
  0x24   :  { %305 = vset.pattern.permute.xlu1 %v350_v6 }
  0x25   :  { %180 = vperm.xlu1 %305, %v29_v1  }
  0x27   :  { %307 = vset.pattern.permute.xlu0 %v351_v7 }
  0x28   :  { %210 = vperm.xlu0 %307, %v29_v1  }
  0x29   :  { %188 = vperm.xlu1 %305, %v31_v0  }
  0x2c   :  { %222 = vperm.xlu0 %307, %v32_v5  }
  0x2d   :  { %192 = vperm.xlu1 %305, %v32_v5  }
  0x31   :  { %308 = vset.pattern.permute.xlu1 %v351_v7 }
  0x32   :  { %214 = vperm.xlu1 %308, %v30_v3  }
  0x36   :  { %218 = vperm.xlu1 %308, %v31_v0  }
  0x90   :  { %v127_v42 = vpop.permute.xlu1 %126  ;;  %v117_v43 = vpop.permute.xlu0 %116 }
  0x91   :  { %v134_v50 = vmul.f32 %v117_v43, %v110_v44  ;;  %v136_v59 = vmul.f32 %v127_v42, %v112_v55 }
  0x94   :  { %v122_v51 = vpop.permute.xlu0 %121 }
  0x95   :  { %v135_v53 = vmul.f32 %v122_v51, %v111_v46  ;;  %v151_v54 = vpop.permute.xlu1 %150 }
  0x96   :  { %v165_v2 = vmul.f32 %v151_v54, %v110_v44 }
  0x97   :  { %v138_v57 = vadd.f32 %v135_v53, %v134_v50  ;;  %v241_v50 = vstv %s240_s0 }
  0x99   :  { %v155_v58 = vpop.permute.xlu0 %154  ;;  %v139_v62 = vadd.f32 %v138_v57, %v136_v59 }
  0x9a   :  { %v132_v60 = vpop.permute.xlu1 %131  ;;  %v166_v63 = vmul.f32 %v155_v58, %v111_v46 }
  0x9b   :  { %v137_v61 = vmul.f32 %v132_v60, %v113_v56 }
  0x9c   :  { %v169_v6 = vadd.f32 %v166_v63, %v165_v2  ;;  %v251_v2 = vstv %s290_s26 }
  0x9d   :  { %v141_v0 = vsel %vm140_vm0, %v137_v61, 0.0  ;;  %v163_v1 = vpop.permute.xlu0 %162 }
  0x9e   :  { %v142_v3 = vadd.f32 %v141_v0, %v139_v62  ;;  %v168_v4 = vmul.f32 %v163_v1, %v113_v56 }
  0x9f   :  { %v159_v5 = vpop.permute.xlu1 %158 }
  0xa0   :  { %v143_v7 = vrot.slane %v142_v3, 4  ;;  %v167_v8 = vmul.f32 %v159_v5, %v112_v55  ;;  %v171_v9 = vsel %vm140_vm0, %v168_v4, 0.0 }
  0xa2   :  { %v144_v10 = vadd.f32 %v143_v7, %v142_v3  ;;  %v170_v11 = vadd.f32 %v169_v6, %v167_v8  ;;  %v185_v14 = vpop.permute.xlu0 %184  ;;  %v255_v6 = vstv %s291_s27 }
  0xa3   :  { %v196_v19 = vmul.f32 %v185_v14, %v111_v46 }
  0xa4   :  { %v172_v12 = vadd.f32 %v171_v9, %v170_v11  ;;  %v181_v13 = vpop.permute.xlu1 %180  ;;  %v145_v15 = vrot.slane %v144_v10, 2 }
  0xa5   :  { %v195_v18 = vmul.f32 %v181_v13, %v110_v44 }
  0xa6   :  { %v173_v16 = vrot.slane %v172_v12, 4  ;;  %v146_v21 = vadd.f32 %v145_v15, %v144_v10 }
  0xa7   :  { %v199_v25 = vadd.f32 %v196_v19, %v195_v18  ;;  %v211_v27 = vpop.permute.xlu0 %210 }
  0xa8   :  { %v174_v17 = vadd.f32 %v173_v16, %v172_v12  ;;  %v189_v20 = vpop.permute.xlu1 %188  ;;  %v147_v29 = vrot.slane %v146_v21, 1  ;;  %v225_v37 = vmul.f32 %v211_v27, %v110_v44 }
  0xa9   :  { %v197_v23 = vmul.f32 %v189_v20, %v112_v55 }
  0xaa   :  { %v175_v22 = vrot.slane %v174_v17, 2  ;;  %v148_v35 = vadd.f32 %v147_v29, %v146_v21 }
  0xab   :  { %v200_v30 = vadd.f32 %v199_v25, %v197_v23  ;;  %v223_v39 = vpop.permute.xlu0 %222 }
  0xac   :  { %v176_v24 = vadd.f32 %v175_v22, %v174_v17  ;;  %v193_v26 = vpop.permute.xlu1 %192  ;;  %v228_v42 = vmul.f32 %v223_v39, %v113_v56  ;;  %v239_v45 = vadd.f32 1.0, %v148_v35 }
  0xad   :  { %v198_v28 = vmul.f32 %v193_v26, %v113_v56  ;;  %v246_v56 = vstv %s289_s25 }
  0xae   :  { %v177_v32 = vrot.slane %v176_v24, 1  ;;  %v231_v54 = vsel %vm140_vm0, %v228_v42, 0.0  ;;  %v242_v57 = vadd.f32 %v241_v50, %v239_v45 }
  0xaf   :  { %v201_v31 = vsel %vm140_vm0, %v198_v28, 0.0 }
  0xb0   :  { %v202_v33 = vadd.f32 %v201_v31, %v200_v30  ;;  %v178_v40 = vadd.f32 %v177_v32, %v176_v24 }
  0xb1   :  { %v215_v34 = vpop.permute.xlu1 %214 }
  0xb2   :  { %v203_v36 = vrot.slane %v202_v33, 4  ;;  %v226_v38 = vmul.f32 %v215_v34, %v111_v46  ;;  %v243_v51 = vadd.f32 1.0, %v178_v40 }
  0xb4   :  { %v204_v41 = vadd.f32 %v203_v36, %v202_v33  ;;  %v229_v48 = vadd.f32 %v226_v38, %v225_v37  ;;  %v244_v60 = vmul.f32 %v243_v51, %v242_v57 }
  0xb5   :  { %v219_v43 = vpop.permute.xlu1 %218 }
  0xb6   :  { %v205_v47 = vrot.slane %v204_v41, 2  ;;  %v227_v49 = vmul.f32 %v219_v43, %v112_v55  ;;  %v247_v0 = vadd.f32 %v246_v56, %v244_v60 }
  0xb8   :  { %v206_v52 = vadd.f32 %v205_v47, %v204_v41  ;;  %v230_v53 = vadd.f32 %v229_v48, %v227_v49 }
  0xba   :  { %v207_v58 = vrot.slane %v206_v52, 1  ;;  %v232_v44 = vadd.f32 %v231_v54, %v230_v53 }
  0xbc   :  { %v233_v46 = vrot.slane %v232_v44, 4  ;;  %v208_v59 = vadd.f32 %v207_v58, %v206_v52 }
  0xbe   :  { %v234_v61 = vadd.f32 %v233_v46, %v232_v44  ;;  %v248_v62 = vadd.f32 1.0, %v208_v59 }
  0xc0   :  { %v235_v63 = vrot.slane %v234_v61, 2  ;;  %v249_v1 = vmul.f32 %v248_v62, %v247_v0 }
  0xc2   :  { %v236_v55 = vadd.f32 %v235_v63, %v234_v61  ;;  %v252_v5 = vadd.f32 %v251_v2, %v249_v1 }
  0xc4   :  { %v237_v3 = vrot.slane %v236_v55, 1 }
  0xc6   :  { %v238_v4 = vadd.f32 %v237_v3, %v236_v55 }
  0xc8   :  { %v253_v7 = vmul.f32 %v252_v5, %v238_v4 }
  0xca   :  { %v256_v8 = vadd.f32 %v255_v6, %v253_v7 }
  0xcc   :  { %257 = vst [vmem:[#allocation5] sm:$0x1] %v256_v8 }
  0xcd   :  { %332 = shalt.err (!%p329_p9)
}
  0xce   :  { %s333_s7 = scalar_lea.hbm %s411_s3, 16 }
  0xcf   :  { %p334_p10 = scmp.ne.s32.totalorder %s411_s3, %s333_s7  ;;  %p337_p11 = scmp.lt.u32.totalorder %s333_s7, %s411_s3 }
  0xd1   :  { %p339_p12 = pnand %p337_p11, %p334_p10 }
  0xd3   :  { %342 = shalt.err (!%p339_p12)
}
  0xd4   :  { %267 = dma.vmem_to_hbm [thread:$0]  %s265_s29, 16, %s411_s3, [#allocation3]  }
  0xd5   :  { %345 = dma.done.wait [#allocation3], 16  }
  0xd6   :  { %346 = vsyncadd [#allocation3], 4294967280 }
  0xd7   :  { %271 = vsyncpa [#allocation3], 1 }
  0xd8   :  { %272 = vsyncpa [#allocation4], 1 }

</bundles_post_ra>
